<compile_context>
chip_gen: v7x
topology: tpu7x:2x2x1
jax: 0.10.0
libtpu: 0.0.40
codegen_flags: <defaults>
</compile_context>

<pallas_src>
import jax
import jax.numpy as jnp
from jax.experimental import pallas as pl
from jax.experimental.pallas import tpu as pltpu

NEG_SLOPE = 0.2
NORM_EPS = 1e-12  # matches torch.nn.functional.normalize default eps


def _round_up(x, m):
    return ((x + m - 1) // m) * m


def _leaky_relu(x):
    return jnp.where(x >= 0, x, NEG_SLOPE * x)


def graph_conv_kernel(a_ref, xk_ref, xr_ref, inv_ref, ws_ref, wn_ref,
                      o_ref, agg_ref):
    """One (row-tile, k-tile) step of the fused GraphConvolution forward.

    a_ref   : (tm, tk)        unnormalized edge-count adjacency block (bf16, exact)
    xk_ref  : (tk, F_in_pad)  node-feature k-slab for the contraction
    xr_ref  : (tm, F_in_pad)  node features of this row tile
    inv_ref : (tm, 1)         1/deg per row (0 for isolated / padded rows)
    ws_ref  : (F_in_pad, F_out_pad)  W_self^T  (zero padded)
    wn_ref  : (F_in_pad, F_out_pad)  W_neigh^T (zero padded)
    o_ref   : (tm, F_out_pad) L2-normalized output rows (lane-dense)
    agg_ref : (tm, F_in_pad)  f32 scratch accumulating sum_j count[i,j] * x[j]
    """
    k = pl.program_id(1)

    @pl.when(k == 0)
    def _():
        agg_ref[...] = jnp.zeros_like(agg_ref)

    # Neighbor-sum accumulation on the MXU (counts upcast to f32; 0/1/small-int
    # counts are exact in bf16 so this is lossless).
    agg_ref[...] += jnp.dot(a_ref[...].astype(jnp.float32), xk_ref[...],
                            preferred_element_type=jnp.float32)

    @pl.when(k == pl.num_programs(1) - 1)
    def _():
        agg = agg_ref[...] * inv_ref[...]                       # scatter-mean
        neigh = _leaky_relu(jnp.dot(agg, wn_ref[...],
                                    preferred_element_type=jnp.float32))
        src = jnp.dot(xr_ref[...], ws_ref[...],
                      preferred_element_type=jnp.float32)
        h = _leaky_relu(src + neigh)                            # 'sum' update + act
        # F.normalize(p=2, dim=1): h / max(||h||_2, eps).  Exact sqrt+divide;
        # padded columns are exact zeros so they do not perturb the norm.
        ss = jnp.sum(h * h, axis=1, keepdims=True)
        norm = jnp.maximum(jnp.sqrt(ss), NORM_EPS)
        o_ref[...] = (h / norm).astype(o_ref.dtype)


def _vmem_capacity_bytes():
    try:
        return int(pltpu.get_tpu_info().vmem_capacity_bytes)
    except Exception:
        return 64 * 1024 * 1024  # conservative fallback: v7x per-TensorCore VMEM


def _pick_tiles(N, a_itemsize, f_in_pad, f_out_pad, vmem_cap):
    """Pick (tm, tk) from the chip's VMEM capacity."""
    if N <= 512:
        return _round_up(min(N, 256), 8), _round_up(N, 128)

    def need(tm, tk):
        return (2 * tm * tk * a_itemsize          # A double buffer
                + tm * tk * 4                     # f32 upcast temp of the A tile
                + 2 * tk * f_in_pad * 4           # X k-slab double buffer
                + 2 * tm * f_in_pad * 4           # X row tile double buffer
                + 4 * f_in_pad * f_out_pad * 4    # two weight tiles (double buffered)
                + 2 * tm * f_out_pad * 4          # output tile double buffer
                + tm * f_in_pad * 4               # agg accumulator scratch
                + 2 * tm * 4)                     # inv_deg

    budget = (vmem_cap * 55) // 100               # headroom for compiler scratch
    tm = 1024 if vmem_cap >= 96 * 1024 * 1024 else 512
    tk = 2048
    while need(tm, tk) > budget and tk > 512:
        tk //= 2
    while need(tm, tk) > budget and tm > 128:
        tm //= 2
    # Keep >= ~8 row tiles so the "parallel" axis shards across 2 TensorCores
    # and the pipeline fills.
    while tm > 128 and pl.cdiv(N, tm) < 8:
        tm //= 2
    return tm, tk


def graph_convolution(node_fts, edge_fts, edges, w_self, w_neigh, *,
                      a_dtype=jnp.bfloat16, tm=None, tk=None):
    """JAX wrapper reproducing GraphConvolution.forward for mean/sum/normalize.

    node_fts : (N, F_in) float32
    edge_fts : (E, Fe)   float32   (unused in 'mean' agg mode, kept for parity)
    edges    : (2, E)    int32     directed edge list (src, dst)
    w_self   : (F_out, F_in) float32  -- PyTorch Linear layout
    w_neigh  : (F_out, F_in) float32
    """
    del edge_fts  # only used by the rnn/gru/lstm aggregation modes
    N, F_in = node_fts.shape
    F_out = w_self.shape[0]
    f_in_pad = _round_up(F_in, 128)
    f_out_pad = _round_up(F_out, 128)
    a_itemsize = jnp.dtype(a_dtype).itemsize

    vmem_cap = _vmem_capacity_bytes()
    auto_tm, auto_tk = _pick_tiles(N, a_itemsize, f_in_pad, f_out_pad, vmem_cap)
    tm = auto_tm if tm is None else tm
    tk = auto_tk if tk is None else tk
    m_pad = _round_up(N, tm)   # row padding decoupled from ...
    k_pad = _round_up(N, tk)   # ... column (contraction) padding

    # edges_undirected = cat([edges, edges.flip(0)], dim=1)
    edges_und = jnp.concatenate([edges, edges[::-1, :]], axis=1)
    rows, cols = edges_und[0], edges_und[1]

    # Unnormalized multi-edge counts scattered straight into the padded
    # streaming buffer (no extra O(N^2) HBM pass); counts are exact in bf16.
    a_cnt = jnp.zeros((m_pad, k_pad), a_dtype).at[rows, cols].add(1.0)

    deg = jnp.zeros((N,), jnp.float32).at[rows].add(1.0)
    inv_deg = jnp.where(deg > 0, 1.0 / jnp.maximum(deg, 1.0), 0.0)
    inv_pad = jnp.zeros((m_pad, 1), jnp.float32).at[:N, 0].set(inv_deg)

    x32 = node_fts.astype(jnp.float32)
    xk = jnp.zeros((k_pad, f_in_pad), jnp.float32).at[:N, :F_in].set(x32)
    xr = jnp.zeros((m_pad, f_in_pad), jnp.float32).at[:N, :F_in].set(x32)

    # Two separate K=128 projection weights, pre-transposed to (F_in, F_out).
    ws_pad = jnp.zeros((f_in_pad, f_out_pad), jnp.float32).at[:F_in, :F_out].set(w_self.T)
    wn_pad = jnp.zeros((f_in_pad, f_out_pad), jnp.float32).at[:F_in, :F_out].set(w_neigh.T)

    grid = (m_pad // tm, k_pad // tk)

    flops = 2 * m_pad * k_pad * f_in_pad + 4 * m_pad * f_in_pad * f_out_pad
    bytes_accessed = (m_pad * k_pad * a_itemsize
                      + (k_pad + 2 * m_pad) * f_in_pad * 4
                      + m_pad * f_out_pad * 4
                      + 2 * f_in_pad * f_out_pad * 4)

    vmem_need = (2 * tm * tk * a_itemsize + tm * tk * 4
                 + 2 * tk * f_in_pad * 4 + 2 * tm * f_in_pad * 4
                 + 4 * f_in_pad * f_out_pad * 4
                 + 2 * tm * f_out_pad * 4 + tm * f_in_pad * 4 + 2 * tm * 4)
    vmem_limit = int(min(max(2 * vmem_need, 32 * 1024 * 1024), vmem_cap))

    out = pl.pallas_call(
        graph_conv_kernel,
        out_shape=jax.ShapeDtypeStruct((m_pad, f_out_pad), jnp.float32),
        grid=grid,
        in_specs=[
            pl.BlockSpec((tm, tk), lambda i, k: (i, k)),               # A counts (streamed)
            pl.BlockSpec((tk, f_in_pad), lambda i, k: (k, 0)),         # X k-slab (streamed)
            pl.BlockSpec((tm, f_in_pad), lambda i, k: (i, 0)),         # X rows of this tile
            pl.BlockSpec((tm, 1), lambda i, k: (i, 0)),                # 1/deg per row
            pl.BlockSpec((f_in_pad, f_out_pad), lambda i, k: (0, 0)),  # W_self^T (resident)
            pl.BlockSpec((f_in_pad, f_out_pad), lambda i, k: (0, 0)),  # W_neigh^T (resident)
        ],
        out_specs=pl.BlockSpec((tm, f_out_pad), lambda i, k: (i, 0)),
        scratch_shapes=[pltpu.VMEM((tm, f_in_pad), jnp.float32)],
        compiler_params=pltpu.CompilerParams(
            dimension_semantics=("parallel", "arbitrary"),
            vmem_limit_bytes=vmem_limit),
        cost_estimate=pl.CostEstimate(
            flops=int(flops), transcendentals=int(m_pad),
            bytes_accessed=int(bytes_accessed)),
    )(a_cnt, xk, xr, inv_pad, ws_pad, wn_pad)

    return out[:N, :F_out]


# ----------------------------- test harness ----------------------------------

def _reference(node_fts, edges, w_self, w_neigh):
    """Pure-JAX (non-Pallas) reference of the same forward math."""
    N = node_fts.shape[0]
    edges_und = jnp.concatenate([edges, edges[::-1, :]], axis=1)
    adj = jnp.zeros((N, N), jnp.float32).at[edges_und[0], edges_und[1]].add(1.0)
    deg = jnp.sum(adj, axis=1, keepdims=True)
    a_mean = jnp.where(deg > 0, adj / jnp.maximum(deg, 1.0), 0.0)
    lrelu = lambda v: jnp.where(v >= 0, v, NEG_SLOPE * v)
    h = lrelu(node_fts @ w_self.T + lrelu((a_mean @ node_fts) @ w_neigh.T))
    n = jnp.maximum(jnp.sqrt(jnp.sum(h * h, axis=1, keepdims=True)), NORM_EPS)
    return h / n


def xavier_uniform(key, shape, gain):
    # PyTorch Linear weight shape (out, in): fan_in = in, fan_out = out
    fan_out, fan_in = shape
    a = gain * jnp.sqrt(6.0 / (fan_in + fan_out))
    return jax.random.uniform(key, shape, jnp.float32, minval=-a, maxval=a)


if __name__ == "__main__":
    key = jax.random.PRNGKey(0)
    k_x, k_e, k_ef, k_ws, k_wn, k_wp, k_x2, k_e2 = jax.random.split(key, 8)

    gain = 1.414
    F_in, F_out, Fe = 8, 16, 4
    w_self = xavier_uniform(k_ws, (F_out, F_in), gain)   # lin_self.weight
    w_neigh = xavier_uniform(k_wn, (F_out, F_in), gain)  # lin_neigh.weight
    w_pool = xavier_uniform(k_wp, (F_in, F_in), gain)    # lin_pool (unused in 'mean')
    # TODO(synk): 'gru'/'lstm'/'rnn' aggregation modes (packed variable-length
    # sequences through an RNN) have no clean static Pallas equivalent here.

    # ---- small graph: single grid step --------------------------------------
    N, E = 16, 24
    node_fts = jax.random.normal(k_x, (N, F_in), jnp.float32)
    edge_fts = jax.random.normal(k_ef, (E, Fe), jnp.float32)
    ring = jnp.stack([jnp.arange(N, dtype=jnp.int32),
                      (jnp.arange(N, dtype=jnp.int32) + 1) % N], axis=0)
    extra = jax.random.randint(k_e, (2, E - N), 0, N, dtype=jnp.int32)
    edges = jnp.concatenate([ring, extra], axis=1)       # (2, E)

    out = jax.block_until_ready(
        graph_convolution(node_fts, edge_fts, edges, w_self, w_neigh))
    ref = _reference(node_fts, edges, w_self, w_neigh)
    assert jnp.allclose(out, ref, atol=1e-4, rtol=1e-4), "small-graph mismatch"

    # ---- medium graph: multi-tile grid (4 row tiles x 4 k tiles) ------------
    N2, E2 = 512, 1536
    node_fts2 = jax.random.normal(k_x2, (N2, F_in), jnp.float32)
    ring2 = jnp.stack([jnp.arange(N2, dtype=jnp.int32),
                       (jnp.arange(N2, dtype=jnp.int32) + 1) % N2], axis=0)
    extra2 = jax.random.randint(k_e2, (2, E2 - N2), 0, N2, dtype=jnp.int32)
    edges2 = jnp.concatenate([ring2, extra2], axis=1)
    edge_fts2 = jnp.zeros((E2, Fe), jnp.float32)

    out2 = jax.block_until_ready(
        graph_convolution(node_fts2, edge_fts2, edges2, w_self, w_neigh,
                          tm=128, tk=128))
    ref2 = _reference(node_fts2, edges2, w_self, w_neigh)
    assert jnp.allclose(out2, ref2, atol=1e-4, rtol=1e-4), "multi-tile mismatch"

    print("KERNEL_OK")
</pallas_src>

<mosaic_0001>
module attributes {stable_mosaic.version = 11 : i64} {
  func.func @graph_conv_kernel(%arg0: i32, %arg1: i32, %arg2: memref<16x128xbf16, #tpu.memory_space<vmem>>, %arg3: memref<128x128xf32, #tpu.memory_space<vmem>>, %arg4: memref<16x128xf32, #tpu.memory_space<vmem>>, %arg5: memref<16x1xf32, #tpu.memory_space<vmem>>, %arg6: memref<128x128xf32, #tpu.memory_space<vmem>>, %arg7: memref<128x128xf32, #tpu.memory_space<vmem>>, %arg8: memref<16x128xf32, #tpu.memory_space<vmem>>, %arg9: memref<16x128xf32, #tpu.memory_space<vmem>>) attributes {dimension_semantics = [#tpu.dimension_semantics<parallel>, #tpu.dimension_semantics<arbitrary>], iteration_bounds = array<i64: 1, 1>, scalar_prefetch = 0 : i64, scratch_operands = 1 : i64, tpu.core_type = #tpu.core_type<tc>, window_params = [{transform_indices = @transform_0, window_bounds = array<i64: 16, 128>}, {transform_indices = @transform_1, window_bounds = array<i64: 128, 128>}, {transform_indices = @transform_2, window_bounds = array<i64: 16, 128>}, {transform_indices = @transform_3, window_bounds = array<i64: 16, 1>}, {pipeline_mode = #tpu.pipeline_mode<synchronous>, transform_indices = @transform_4, window_bounds = array<i64: 128, 128>}, {pipeline_mode = #tpu.pipeline_mode<synchronous>, transform_indices = @transform_5, window_bounds = array<i64: 128, 128>}, {transform_indices = @transform_6, window_bounds = array<i64: 16, 128>}]} {
    %c0_i32 = arith.constant 0 : i32
    %0 = arith.cmpi eq, %arg1, %c0_i32 : i32
    %1 = arith.extui %0 : i1 to i32
    %c0_i32_0 = arith.constant 0 : i32
    %2 = arith.cmpi ne, %1, %c0_i32_0 : i32
    scf.if %2 {
      %cst_10 = arith.constant 0.000000e+00 : f32
      %13 = vector.broadcast %cst_10 : f32 to vector<16x128xf32>
      %c0_11 = arith.constant 0 : index
      %c0_12 = arith.constant 0 : index
      %14 = vector.load %arg9[%c0_11, %c0_12] : memref<16x128xf32, #tpu.memory_space<vmem>>, vector<16x128xf32>
      tpu.vector_store %arg9[%c0_11, %c0_12], %13 {strides = array<i32>} : memref<16x128xf32, #tpu.memory_space<vmem>>, vector<16x128xf32>,
    } else {
    }
    %c0 = arith.constant 0 : index
    %c0_1 = arith.constant 0 : index
    %3 = vector.load %arg9[%c0, %c0_1] : memref<16x128xf32, #tpu.memory_space<vmem>>, vector<16x128xf32>
    %c0_2 = arith.constant 0 : index
    %c0_3 = arith.constant 0 : index
    %4 = vector.load %arg2[%c0_2, %c0_3] : memref<16x128xbf16, #tpu.memory_space<vmem>>, vector<16x128xbf16>
    %5 = arith.extf %4 : vector<16x128xbf16> to vector<16x128xf32>
    %c0_4 = arith.constant 0 : index
    %c0_5 = arith.constant 0 : index
    %6 = vector.load %arg3[%c0_4, %c0_5] : memref<128x128xf32, #tpu.memory_space<vmem>>, vector<128x128xf32>
    %cst = arith.constant dense<0.000000e+00> : vector<16x128xf32>
    %7 = tpu.matmul %5, %6, %cst {dimension_numbers = #tpu.dot_dimension_numbers<[1], [0], [0], [1], [0, 0, 1, 1], [], []>} : vector<16x128xf32>, vector<128x128xf32>, vector<16x128xf32> -> vector<16x128xf32>
    %8 = arith.addf %3, %7 : vector<16x128xf32>
    %c0_6 = arith.constant 0 : index
    %c0_7 = arith.constant 0 : index
    %9 = vector.load %arg9[%c0_6, %c0_7] : memref<16x128xf32, #tpu.memory_space<vmem>>, vector<16x128xf32>
    tpu.vector_store %arg9[%c0_6, %c0_7], %8 {strides = array<i32>} : memref<16x128xf32, #tpu.memory_space<vmem>>, vector<16x128xf32>,
    %c0_i32_8 = arith.constant 0 : i32
    %10 = arith.cmpi eq, %arg1, %c0_i32_8 : i32
    %11 = arith.extui %10 : i1 to i32
    %c0_i32_9 = arith.constant 0 : i32
    %12 = arith.cmpi ne, %11, %c0_i32_9 : i32
    scf.if %12 {
      %c0_10 = arith.constant 0 : index
      %c0_11 = arith.constant 0 : index
      %13 = vector.load %arg9[%c0_10, %c0_11] : memref<16x128xf32, #tpu.memory_space<vmem>>, vector<16x128xf32>
      %c0_12 = arith.constant 0 : index
      %c0_13 = arith.constant 0 : index
      %14 = vector.load %arg5[%c0_12, %c0_13] : memref<16x1xf32, #tpu.memory_space<vmem>>, vector<16x1xf32>
      %15 = vector.broadcast %14 : vector<16x1xf32> to vector<16x128xf32>
      %16 = arith.mulf %13, %15 : vector<16x128xf32>
      %c0_14 = arith.constant 0 : index
      %c0_15 = arith.constant 0 : index
      %17 = vector.load %arg7[%c0_14, %c0_15] : memref<128x128xf32, #tpu.memory_space<vmem>>, vector<128x128xf32>
      %cst_16 = arith.constant dense<0.000000e+00> : vector<16x128xf32>
      %18 = tpu.matmul %16, %17, %cst_16 {dimension_numbers = #tpu.dot_dimension_numbers<[1], [0], [0], [1], [0, 0, 1, 1], [], []>} : vector<16x128xf32>, vector<128x128xf32>, vector<16x128xf32> -> vector<16x128xf32>
      %cst_17 = arith.constant 0.000000e+00 : f32
      %19 = vector.broadcast %cst_17 : f32 to vector<16x128xf32>
      %20 = arith.cmpf oge, %18, %19 : vector<16x128xf32>
      %cst_18 = arith.constant 2.000000e-01 : f32
      %21 = vector.broadcast %cst_18 : f32 to vector<16x128xf32>
      %22 = arith.mulf %21, %18 : vector<16x128xf32>
      %23 = arith.select %20, %18, %22 : vector<16x128xi1>, vector<16x128xf32>
      %c0_19 = arith.constant 0 : index
      %c0_20 = arith.constant 0 : index
      %24 = vector.load %arg4[%c0_19, %c0_20] : memref<16x128xf32, #tpu.memory_space<vmem>>, vector<16x128xf32>
      %c0_21 = arith.constant 0 : index
      %c0_22 = arith.constant 0 : index
      %25 = vector.load %arg6[%c0_21, %c0_22] : memref<128x128xf32, #tpu.memory_space<vmem>>, vector<128x128xf32>
      %cst_23 = arith.constant dense<0.000000e+00> : vector<16x128xf32>
      %26 = tpu.matmul %24, %25, %cst_23 {dimension_numbers = #tpu.dot_dimension_numbers<[1], [0], [0], [1], [0, 0, 1, 1], [], []>} : vector<16x128xf32>, vector<128x128xf32>, vector<16x128xf32> -> vector<16x128xf32>
      %27 = arith.addf %26, %23 : vector<16x128xf32>
      %cst_24 = arith.constant 0.000000e+00 : f32
      %28 = vector.broadcast %cst_24 : f32 to vector<16x128xf32>
      %29 = arith.cmpf oge, %27, %28 : vector<16x128xf32>
      %cst_25 = arith.constant 2.000000e-01 : f32
      %30 = vector.broadcast %cst_25 : f32 to vector<16x128xf32>
      %31 = arith.mulf %30, %27 : vector<16x128xf32>
      %32 = arith.select %29, %27, %31 : vector<16x128xi1>, vector<16x128xf32>
      %33 = arith.mulf %32, %32 : vector<16x128xf32>
      %cst_26 = arith.constant dense<0.000000e+00> : vector<16xf32>
      %34 = vector.multi_reduction <add>, %33, %cst_26 [1] : vector<16x128xf32> to vector<16xf32>
      %35 = vector.shape_cast %34 : vector<16xf32> to vector<16x1xf32>
      %36 = math.sqrt %35 : vector<16x1xf32>
      %cst_27 = arith.constant 9.99999996E-13 : f32
      %37 = vector.broadcast %cst_27 : f32 to vector<16x1xf32>
      %38 = arith.maximumf %36, %37 : vector<16x1xf32>
      %39 = vector.broadcast %38 : vector<16x1xf32> to vector<16x128xf32>
      %40 = arith.divf %32, %39 : vector<16x128xf32>
      %c0_28 = arith.constant 0 : index
      %c0_29 = arith.constant 0 : index
      %41 = vector.load %arg8[%c0_28, %c0_29] : memref<16x128xf32, #tpu.memory_space<vmem>>, vector<16x128xf32>
      tpu.vector_store %arg8[%c0_28, %c0_29], %40 {strides = array<i32>} : memref<16x128xf32, #tpu.memory_space<vmem>>, vector<16x128xf32>,
    } else {
    }
    return
  }
  func.func @transform_0(%arg0: i32, %arg1: i32) -> (i32, i32) {
    %c0_i32 = arith.constant 0 : i32
    return %arg0, %arg1 : i32, i32
  }
  func.func @transform_1(%arg0: i32, %arg1: i32) -> (i32, i32) {
    %c0_i32 = arith.constant 0 : i32
    %c0_i32_0 = arith.constant 0 : i32
    return %arg1, %c0_i32 : i32, i32
  }
  func.func @transform_2(%arg0: i32, %arg1: i32) -> (i32, i32) {
    %c0_i32 = arith.constant 0 : i32
    %c0_i32_0 = arith.constant 0 : i32
    return %arg0, %c0_i32 : i32, i32
  }
  func.func @transform_3(%arg0: i32, %arg1: i32) -> (i32, i32) {
    %c0_i32 = arith.constant 0 : i32
    %c0_i32_0 = arith.constant 0 : i32
    return %arg0, %c0_i32 : i32, i32
  }
  func.func @transform_4(%arg0: i32, %arg1: i32) -> (i32, i32) {
    %c0_i32 = arith.constant 0 : i32
    %c0_i32_0 = arith.constant 0 : i32
    %c0_i32_1 = arith.constant 0 : i32
    return %c0_i32, %c0_i32_0 : i32, i32
  }
  func.func @transform_5(%arg0: i32, %arg1: i32) -> (i32, i32) {
    %c0_i32 = arith.constant 0 : i32
    %c0_i32_0 = arith.constant 0 : i32
    %c0_i32_1 = arith.constant 0 : i32
    return %c0_i32, %c0_i32_0 : i32, i32
  }
  func.func @transform_6(%arg0: i32, %arg1: i32) -> (i32, i32) {
    %c0_i32 = arith.constant 0 : i32
    %c0_i32_0 = arith.constant 0 : i32
    return %arg0, %c0_i32 : i32, i32
  }
}

</mosaic_0001>

<bundles_post_ra>
// kernel: tpu_custom_call.1
= control target key start
LH: loop header
LB: loop body
LE: loop exit
PB: predicated region body
PF: predicated region fallthrough
CT: control target
= control target key end

     0   :  { %11 = vsyncpa [#allocation4], 0  ;;  %s930_s0 = inlined_call_operand.vmem [shape: bf16[16,128], index: 0, kind: input, shape index: {}]   ;;  %s931_s1 = inlined_call_operand.hbm [shape: f32[128,128], index: 1, kind: input, shape index: {}]   ;;  %s932_s2 = inlined_call_operand.vmem [shape: f32[16,128], index: 2, kind: input, shape index: {}]   ;;  %s933_s3 = inlined_call_operand.vmem [shape: f32[16,1], index: 3, kind: input, shape index: {}]   ;;  %s934_s4 = inlined_call_operand.hbm [shape: f32[128,128], index: 4, kind: input, shape index: {}]   ;;  %s935_s5 = inlined_call_operand.hbm [shape: f32[128,128], index: 5, kind: input, shape index: {}]   ;;  %s936_s6 = inlined_call_operand.hbm [shape: f32[16,128], index: 6, kind: output, shape index: {}]  }
   0x1   :  { %12 = vsyncpa [#allocation7], 0 }
   0x2   :  { %13 = vsyncpa [#allocation5], 0  ;;  %s802_s21 = smov [#allocation6]   ;;  %s803_s23 = smov [#allocation3]  }
   0x3   :  { %s37_s22 = sshll.u32 %s802_s21, 4  ;;  %s21_s24 = sshll.u32 %s803_s23, 4  ;;  %s38_s22 = int_to_ptr.vmem [resolvable:$true] %s37_s22  ;;  %s844_s24 = int_to_ptr.vmem [resolvable:$true] %s21_s24 }
   0x4   :  { %s708_s27 = scalar_lea.hbm %s934_s4, 2048 }
   0x5   :  { %p709_p0 = scmp.ne.s32.totalorder %s934_s4, %s708_s27  ;;  %p712_p1 = scmp.lt.u32.totalorder %s708_s27, %s934_s4 }
   0x7   :  { %p714_p2 = pnand %p712_p1, %p709_p0 }
   0x9   :  { %717 = shalt.err (!%p714_p2)
}
   0xa   :  { %s718_s8 = scalar_lea.vmem %s38_s22, 2048  ;;  %p723_p4 = scmp.lt.s32.totalorder %s38_s22, %s38_s22 }
   0xb   :  { %p719_p3 = scmp.ne.s32.totalorder %s38_s22, %s718_s8  ;;  %p724_p5 = scmp.lt.s32.totalorder %s718_s8, %s718_s8 }
   0xd   :  { %p725_p6 = por %p724_p5, %p723_p4 }
   0xf   :  { %p726_p7 = pnand %p725_p6, %p719_p3 }
  0x11   :  { %729 = shalt.err (!%p726_p7)
}
  0x12   :  { %s804_s9 = smov 128   ;;  %s805_s10 = smov 8  }
  0x13   :  { %43 = dma.hbm_to_vmem [thread:$0]  %s934_s4, 2048, %s38_s22, [#allocation7], %s804_s9, %s804_s9, %s805_s10  }
  0x14   :  { %s730_s15 = scalar_lea.hbm %s931_s1, 2048 }
  0x15   :  { %p731_p8 = scmp.ne.s32.totalorder %s931_s1, %s730_s15  ;;  %p734_p9 = scmp.lt.u32.totalorder %s730_s15, %s931_s1 }
  0x17   :  { %p736_p10 = pnand %p734_p9, %p731_p8 }
  0x19   :  { %739 = shalt.err (!%p736_p10)
}
  0x1a   :  { %s740_s20 = scalar_lea.vmem %s844_s24, 2048  ;;  %p745_p12 = scmp.lt.s32.totalorder %s844_s24, %s844_s24 }
  0x1b   :  { %p741_p11 = scmp.ne.s32.totalorder %s844_s24, %s740_s20  ;;  %p746_p13 = scmp.lt.s32.totalorder %s740_s20, %s740_s20 }
  0x1d   :  { %p747_p0 = por %p746_p13, %p745_p12 }
  0x1f   :  { %p748_p1 = pnand %p747_p0, %p741_p11 }
  0x21   :  { %751 = shalt.err (!%p748_p1)
}
  0x22   :  { %27 = dma.hbm_to_vmem [thread:$0]  %s931_s1, 2048, %s844_s24, [#allocation4], %s804_s9, %s804_s9, %s805_s10  }
  0x23   :  { %s806_s22 = smov [#allocation8]   ;;  %s752_s27 = scalar_lea.hbm %s935_s5, 2048 }
  0x24   :  { %s49_s23 = sshll.u32 %s806_s22, 4  ;;  %p753_p2 = scmp.ne.s32.totalorder %s935_s5, %s752_s27  ;;  %s50_s23 = int_to_ptr.vmem [resolvable:$true] %s49_s23 }
  0x25   :  { %p756_p3 = scmp.lt.u32.totalorder %s752_s27, %s935_s5 }
  0x27   :  { %p758_p4 = pnand %p756_p3, %p753_p2 }
  0x29   :  { %761 = shalt.err (!%p758_p4)
}
  0x2a   :  { %s762_s8 = scalar_lea.vmem %s50_s23, 2048  ;;  %p767_p6 = scmp.lt.s32.totalorder %s50_s23, %s50_s23 }
  0x2b   :  { %p763_p5 = scmp.ne.s32.totalorder %s50_s23, %s762_s8  ;;  %p768_p7 = scmp.lt.s32.totalorder %s762_s8, %s762_s8 }
  0x2d   :  { %p769_p8 = por %p768_p7, %p767_p6 }
  0x2f   :  { %p770_p9 = pnand %p769_p8, %p763_p5 }
  0x31   :  { %773 = shalt.err (!%p770_p9)
}
  0x32   :  { %55 = dma.hbm_to_vmem [thread:$0]  %s935_s5, 2048, %s50_s23, [#allocation7], %s804_s9, %s804_s9, %s805_s10  }
  0x33   :  { %796 = dma.done.wait [#allocation4], 2048  }
  0x34   :  { %797 = vsyncadd [#allocation4], 4294965248 }
  0x35   :  { %798 = dma.done.wait [#allocation7], 4096  }
  0x36   :  { %799 = vsyncadd [#allocation7], 4294963200  ;;  %v807_v0 = vmov 0   ;;  %v77_v1 = vld [vmem:[#allocation3] sm:$0xff]  ;;  %v78_v2 = vld [vmem:[#allocation3 + $0x8] sm:$0xff] }
  0x37   :  { %699 = vset.pattern.permute.xlu0 %v807_v0  ;;  %v79_v3 = vld [vmem:[#allocation3 + $0x10] sm:$0xff]  ;;  %v596_v4 = vpack.c.bf16 %v78_v2, %v77_v1  ;;  %v80_v5 = vld [vmem:[#allocation3 + $0x18] sm:$0xff]  ;;  %v81_v7 = vld [vmem:[#allocation3 + $0x20] sm:$0xff] }
  0x38   :  { %v600_v6 = vpack.c.bf16 %v80_v5, %v79_v3  ;;  %v82_v8 = vld [vmem:[#allocation3 + $0x28] sm:$0xff]  ;;  %v83_v10 = vld [vmem:[#allocation3 + $0x30] sm:$0xff]  ;;  %v899_v11 = vld [vmem:[%s930_s0] sm:$0xff]  }
  0x39   :  { %597 = vmatprep.subr.bf16.mxu0 %v596_v4  ;;  %v604_v9 = vpack.c.bf16 %v82_v8, %v81_v7  ;;  %v177_v12 = vld [vmem:[%s933_s3] sm:$0xff]  ;;  %v84_v13 = vld [vmem:[#allocation3 + $0x38] sm:$0xff]  ;;  %v435_v14 = vunpack.c.l.bf16 %v899_v11  ;;  %v192_v16 = vld [vmem:[#allocation8 + $0x8] sm:$0xff]  ;;  %v436_v55 = vunpack.c.h.bf16 %v899_v11 }
  0x3a   :  { %599 = vmatpush3.bf16.msra.mxu0 %v596_v4  ;;  %181 = vperm.xlu0 %699, %v177_v12   ;;  %v191_v15 = vld [vmem:[#allocation8] sm:$0xff]  ;;  %v178_v17 = vld [vmem:[%s933_s3 + $0x8] sm:$0xff]  ;;  %v193_v19 = vld [vmem:[#allocation8 + $0x10] sm:$0xff]  ;;  %v608_v21 = vpack.c.bf16 %v84_v13, %v83_v10 }
  0x3b   :  { %601 = vmatprep.subr.bf16.mxu0 %v600_v6  ;;  %v628_v18 = vpack.c.bf16 %v192_v16, %v191_v15  ;;  %523 = vmatprep.mubr.f32.mxu0 %v435_v14  ;;  %v194_v20 = vld [vmem:[#allocation8 + $0x18] sm:$0xff]  ;;  %v195_v23 = vld [vmem:[#allocation8 + $0x20] sm:$0xff]  ;;  %v196_v24 = vld [vmem:[#allocation8 + $0x28] sm:$0xff] }
  0x3c   :  { %v632_v22 = vpack.c.bf16 %v194_v20, %v193_v19  ;;  %v85_v25 = vld [vmem:[#allocation3 + $0x40] sm:$0xff]  ;;  %v86_v26 = vld [vmem:[#allocation3 + $0x48] sm:$0xff]  ;;  %v636_v27 = vpack.c.bf16 %v196_v24, %v195_v23  ;;  %v197_v28 = vld [vmem:[#allocation8 + $0x30] sm:$0xff] }
  0x3d   :  { %629 = vmatprep.subr.bf16.mxu1 %v628_v18  ;;  %v198_v29 = vld [vmem:[#allocation8 + $0x38] sm:$0xff]  ;;  %v612_v30 = vpack.c.bf16 %v86_v26, %v85_v25  ;;  %v87_v31 = vld [vmem:[#allocation3 + $0x50] sm:$0xff]  ;;  %v199_v34 = vld [vmem:[#allocation8 + $0x40] sm:$0xff] }
  0x3e   :  { %603 = vmatpush3.bf16.msra.mxu0 %v600_v6  ;;  %186 = vperm.xlu0 %699, %v178_v17   ;;  %v88_v32 = vld [vmem:[#allocation3 + $0x58] sm:$0xff]  ;;  %v640_v33 = vpack.c.bf16 %v198_v29, %v197_v28  ;;  %v200_v35 = vld [vmem:[#allocation8 + $0x48] sm:$0xff]  ;;  %v89_v37 = vld [vmem:[#allocation3 + $0x60] sm:$0xff] }
  0x3f   :  { %605 = vmatprep.subr.bf16.mxu0 %v604_v9  ;;  %631 = vmatpush3.bf16.msra.mxu1 %v628_v18  ;;  %v616_v36 = vpack.c.bf16 %v88_v32, %v87_v31  ;;  %v90_v38 = vld [vmem:[#allocation3 + $0x68] sm:$0xff]  ;;  %v644_v39 = vpack.c.bf16 %v200_v35, %v199_v34  ;;  %v201_v40 = vld [vmem:[#allocation8 + $0x50] sm:$0xff]  ;;  %v202_v41 = vld [vmem:[#allocation8 + $0x58] sm:$0xff] }
  0x40   :  { %633 = vmatprep.subr.bf16.mxu1 %v632_v22  ;;  %v620_v42 = vpack.c.bf16 %v90_v38, %v89_v37  ;;  %v91_v43 = vld [vmem:[#allocation3 + $0x70] sm:$0xff]  ;;  %v92_v44 = vld [vmem:[#allocation3 + $0x78] sm:$0xff]  ;;  %v648_v45 = vpack.c.bf16 %v202_v41, %v201_v40  ;;  %v203_v46 = vld [vmem:[#allocation8 + $0x60] sm:$0xff] }
  0x41   :  { %v204_v47 = vld [vmem:[#allocation8 + $0x68] sm:$0xff]  ;;  %v624_v48 = vpack.c.bf16 %v92_v44, %v91_v43  ;;  %v290_v49 = vld [vmem:[#allocation6] sm:$0xff]  ;;  %v292_v53 = vld [vmem:[#allocation6 + $0x10] sm:$0xff] }
  0x42   :  { %607 = vmatpush3.bf16.msra.mxu0 %v604_v9  ;;  %v291_v50 = vld [vmem:[#allocation6 + $0x8] sm:$0xff]  ;;  %v652_v51 = vpack.c.bf16 %v204_v47, %v203_v46  ;;  %v293_v54 = vld [vmem:[#allocation6 + $0x18] sm:$0xff]  ;;  %v294_v57 = vld [vmem:[#allocation6 + $0x20] sm:$0xff] }
  0x43   :  { %609 = vmatprep.subr.bf16.mxu0 %v608_v21  ;;  %635 = vmatpush3.bf16.msra.mxu1 %v632_v22  ;;  %v660_v52 = vpack.c.bf16 %v291_v50, %v290_v49  ;;  %v664_v56 = vpack.c.bf16 %v293_v54, %v292_v53  ;;  %v295_v58 = vld [vmem:[#allocation6 + $0x28] sm:$0xff]  ;;  %v296_v60 = vld [vmem:[#allocation6 + $0x30] sm:$0xff]  ;;  %v297_v61 = vld [vmem:[#allocation6 + $0x38] sm:$0xff] }
  0x44   :  { %637 = vmatprep.subr.bf16.mxu1 %v636_v27  ;;  %v668_v59 = vpack.c.bf16 %v295_v58, %v294_v57  ;;  %v672_v62 = vpack.c.bf16 %v297_v61, %v296_v60  ;;  %v298_v63 = vld [vmem:[#allocation6 + $0x40] sm:$0xff]  ;;  %v299_v0 = vld [vmem:[#allocation6 + $0x48] sm:$0xff]  ;;  %v300_v2 = vld [vmem:[#allocation6 + $0x50] sm:$0xff] }
  0x45   :  { %v676_v1 = vpack.c.bf16 %v299_v0, %v298_v63  ;;  %v301_v3 = vld [vmem:[#allocation6 + $0x58] sm:$0xff]  ;;  %v302_v5 = vld [vmem:[#allocation6 + $0x60] sm:$0xff]  ;;  %v303_v6 = vld [vmem:[#allocation6 + $0x68] sm:$0xff] }
  0x46   :  { %611 = vmatpush3.bf16.msra.mxu0 %v608_v21  ;;  %v680_v4 = vpack.c.bf16 %v301_v3, %v300_v2  ;;  %v684_v7 = vpack.c.bf16 %v303_v6, %v302_v5  ;;  %v205_v8 = vld [vmem:[#allocation8 + $0x70] sm:$0xff]  ;;  %v206_v9 = vld [vmem:[#allocation8 + $0x78] sm:$0xff]  ;;  %v288_v14 = vld [vmem:[%s932_s2] sm:$0xff] }
  0x47   :  { %613 = vmatprep.subr.bf16.mxu0 %v612_v30  ;;  %639 = vmatpush3.bf16.msra.mxu1 %v636_v27  ;;  %v656_v10 = vpack.c.bf16 %v206_v9, %v205_v8  ;;  %v304_v11 = vld [vmem:[#allocation6 + $0x70] sm:$0xff]  ;;  %v305_v12 = vld [vmem:[#allocation6 + $0x78] sm:$0xff]  ;;  %v289_v15 = vld [vmem:[%s932_s2 + $0x8] sm:$0xff]  ;;  %s808_s2 = smov [#allocation9]  }
  0x48   :  { %641 = vmatprep.subr.bf16.mxu1 %v640_v33  ;;  %v688_v13 = vpack.c.bf16 %v305_v12, %v304_v11  ;;  %s420_s18 = sshll.u32 %s808_s2, 4  ;;  %s421_s18 = int_to_ptr.vmem [resolvable:$true] %s420_s18 }
  0x49   :  { %s774_s19 = scalar_lea.vmem %s421_s18, 256  ;;  %p779_p11 = scmp.lt.s32.totalorder %s421_s18, %s421_s18 }
  0x4a   :  { %615 = vmatpush3.bf16.msra.mxu0 %v612_v30  ;;  %p775_p10 = scmp.ne.s32.totalorder %s421_s18, %s774_s19  ;;  %p780_p12 = scmp.lt.s32.totalorder %s774_s19, %s774_s19 }
  0x4b   :  { %617 = vmatprep.subr.bf16.mxu0 %v616_v36  ;;  %643 = vmatpush3.bf16.msra.mxu1 %v640_v33 }
  0x4c   :  { %645 = vmatprep.subr.bf16.mxu1 %v644_v39  ;;  %p781_p13 = por %p780_p12, %p779_p11 }
  0x4e   :  { %619 = vmatpush3.bf16.msra.mxu0 %v616_v36  ;;  %p782_p0 = pnand %p781_p13, %p775_p10 }
  0x4f   :  { %621 = vmatprep.subr.bf16.mxu0 %v620_v42  ;;  %647 = vmatpush3.bf16.msra.mxu1 %v644_v39 }
  0x50   :  { %649 = vmatprep.subr.bf16.mxu1 %v648_v45 }
  0x52   :  { %623 = vmatpush3.bf16.msra.mxu0 %v620_v42 }
  0x53   :  { %625 = vmatprep.subr.bf16.mxu0 %v624_v48  ;;  %651 = vmatpush3.bf16.msra.mxu1 %v648_v45 }
  0x54   :  { %653 = vmatprep.subr.bf16.mxu1 %v652_v51 }
  0x56   :  { %627 = vmatpush3.bf16.msra.mxu0 %v624_v48 }
  0x57   :  { %661 = vmatprep.subr.bf16.mxu0 %v660_v52  ;;  %655 = vmatpush3.bf16.msra.mxu1 %v652_v51 }
  0x58   :  { %657 = vmatprep.subr.bf16.mxu1 %v656_v10 }
  0x59   :  { %524 = vmatmul.mubr.f32.vlgmr.msra.gmra.mrb[0].mxu0 %v436_v55 }
  0x5a   :  { %663 = vmatpush3.bf16.msra.mxu0 %v660_v52  ;;  %593 = vmatprep.mubr.f32.mxu0 %v288_v14 }
  0x5b   :  { %665 = vmatprep.subr.bf16.mxu0 %v664_v56  ;;  %659 = vmatpush3.bf16.msra.mxu1 %v656_v10 }
  0x5e   :  { %667 = vmatpush3.bf16.msra.mxu0 %v664_v56 }
  0x5f   :  { %669 = vmatprep.subr.bf16.mxu0 %v668_v59 }
  0x62   :  { %671 = vmatpush3.bf16.msra.mxu0 %v668_v59 }
  0x63   :  { %673 = vmatprep.subr.bf16.mxu0 %v672_v62 }
  0x66   :  { %675 = vmatpush3.bf16.msra.mxu0 %v672_v62 }
  0x67   :  { %677 = vmatprep.subr.bf16.mxu0 %v676_v1 }
  0x6a   :  { %679 = vmatpush3.bf16.msra.mxu0 %v676_v1 }
  0x6b   :  { %681 = vmatprep.subr.bf16.mxu0 %v680_v4 }
  0x6e   :  { %683 = vmatpush3.bf16.msra.mxu0 %v680_v4 }
  0x6f   :  { %685 = vmatprep.subr.bf16.mxu0 %v684_v7 }
  0x72   :  { %687 = vmatpush3.bf16.msra.mxu0 %v684_v7 }
  0x73   :  { %689 = vmatprep.subr.bf16.mxu0 %v688_v13 }
  0x76   :  { %691 = vmatpush3.bf16.msra.mxu0 %v688_v13 }
  0x79   :  { %594 = vmatmul.mubr.f32.vlgmr.msra.gmra.mrb[2].mxu0 %v289_v15 }
  0xb9   :  { %v182_v16 = vpop.permute.xlu0 %181 }
  0xbd   :  { %v187_v19 = vpop.permute.xlu0 %186 }
 0x12c   :  { %v525_v17 = vpop.f32.mrb[0].mxu0 }
 0x12d   :  { %v159_v18 = vpop.f32.mrb[1].mxu0  ;;  %v190_v21 = vmul.f32 %v525_v17, %v187_v19 }
 0x12e   :  { %v189_v20 = vmul.f32 %v182_v16, %v159_v18 }
 0x130   :  { %558 = vmatprep.mubr.f32.mxu1 %v189_v20 }
 0x131   :  { %559 = vmatmul.mubr.f32.vlgmr.msra.gmra.mrb[0].mxu1 %v190_v21 }
 0x14c   :  { %v595_v22 = vpop.f32.mrb[2].mxu0 }
 0x14d   :  { %v372_v23 = vpop.f32.mrb[3].mxu0 }
 0x204   :  { %v560_v24 = vpop.f32.mrb[0].mxu1 }
 0x205   :  { %vm283_vm0 = vcmp.ge.f32.partialorder %v560_v24, 0.0  ;;  %v285_v25 = vmul.f32 0.2, %v560_v24  ;;  %v273_v26 = vpop.f32.mrb[1].mxu1 }
 0x206   :  { %vm282_vm1 = vcmp.ge.f32.partialorder %v273_v26, 0.0  ;;  %v284_v27 = vmul.f32 0.2, %v273_v26 }
 0x207   :  { %v287_v28 = vsel %vm283_vm0, %v560_v24, %v285_v25 }
 0x208   :  { %v378_v29 = vadd.f32 %v595_v22, %v287_v28  ;;  %v286_v30 = vsel %vm282_vm1, %v273_v26, %v284_v27 }
 0x209   :  { %v373_v31 = vadd.f32 %v372_v23, %v286_v30 }
 0x20a   :  { %v384_v32 = vmul.f32 0.2, %v378_v29  ;;  %vm382_vm3 = vcmp.ge.f32.partialorder %v378_v29, 0.0 }
 0x20b   :  { %v383_v33 = vmul.f32 0.2, %v373_v31  ;;  %vm381_vm2 = vcmp.ge.f32.partialorder %v373_v31, 0.0 }
 0x20c   :  { %v386_v36 = vsel %vm382_vm3, %v378_v29, %v384_v32 }
 0x20d   :  { %v385_v34 = vsel %vm381_vm2, %v373_v31, %v383_v33  ;;  %v388_v37 = vmul.f32 %v386_v36, %v386_v36 }
 0x20e   :  { %v387_v35 = vmul.f32 %v385_v34, %v385_v34 }
 0x210   :  { %389 = vadd.xlane.f32.xlu1 %v387_v35 }
 0x214   :  { %391 = vadd.xlane.f32.xlu1 %v388_v37 }
 0x29d   :  { %v390_v38 = vpop.xlane.xlu1 %389 }
 0x29e   :  { %700 = vrsqrt.f32 %v390_v38  ;;  %vm395_vm4 = vcmp.eq.f32.partialorder %v390_v38, inf  ;;  %v398_v42 = vand.u32 2147483648, %v390_v38  ;;  %vm397_vm5 = vcmp.eq.f32.partialorder %v390_v38, 0.0 }
 0x2a1   :  { %v392_v39 = vpop.xlane.xlu1 %391 }
 0x2a2   :  { %702 = vrsqrt.f32 %v392_v39  ;;  %vm402_vm6 = vcmp.eq.f32.partialorder %v392_v39, inf  ;;  %v405_v48 = vand.u32 2147483648, %v392_v39  ;;  %vm404_vm7 = vcmp.eq.f32.partialorder %v392_v39, 0.0 }
 0x2a8   :  { %v701_v40 = vpop.eup %700 }
 0x2a9   :  { %v394_v41 = vmul.f32 %v701_v40, %v390_v38 }
 0x2ab   :  { %v396_v43 = vsel %vm395_vm4, %v390_v38, %v394_v41 }
 0x2ac   :  { %v703_v44 = vpop.eup %702  ;;  %v399_v45 = vsel %vm397_vm5, %v398_v42, %v396_v43 }
 0x2ad   :  { %v407_v46 = vmax.f32 %v399_v45, 1e-12  ;;  %v401_v47 = vmul.f32 %v703_v44, %v392_v39 }
 0x2af   :  { %704 = vrcp.f32 %v407_v46  ;;  %v403_v49 = vsel %vm402_vm6, %v392_v39, %v401_v47 }
 0x2b0   :  { %v406_v50 = vsel %vm404_vm7, %v405_v48, %v403_v49 }
 0x2b1   :  { %v408_v51 = vmax.f32 %v406_v50, 1e-12 }
 0x2b3   :  { %706 = vrcp.f32 %v408_v51 }
 0x2b9   :  { %v705_v52 = vpop.eup %704 }
 0x2ba   :  { %v410_v53 = vmul.f32 %v705_v52, %v385_v34 }
 0x2bc   :  { %413 = vst [vmem:[#allocation9] sm:$0xff] %v410_v53 }
 0x2bd   :  { %v707_v54 = vpop.eup %706 }
 0x2be   :  { %v412_v55 = vmul.f32 %v707_v54, %v386_v36 }
 0x2c0   :  { %414 = vst [vmem:[#allocation9 + $0x8] sm:$0xff] %v412_v55 }
 0x2c1   :  { %785 = shalt.err (!%p782_p0)
}
 0x2c2   :  { %s786_s21 = scalar_lea.hbm %s936_s6, 256 }
 0x2c3   :  { %p787_p1 = scmp.ne.s32.totalorder %s936_s6, %s786_s21  ;;  %p790_p2 = scmp.lt.u32.totalorder %s786_s21, %s936_s6 }
 0x2c5   :  { %p792_p3 = pnand %p790_p2, %p787_p1 }
 0x2c7   :  { %795 = shalt.err (!%p792_p3)
}
 0x2c8   :  { %426 = dma.vmem_to_hbm [thread:$0]  %s421_s18, 256, %s936_s6, [#allocation5], %s804_s9, %s804_s9, %s805_s10  }
 0x2c9   :  { %800 = dma.done.wait [#allocation5], 256  }
 0x2ca   :  { %801 = vsyncadd [#allocation5], 4294967040 }
 0x2cb   :  { %430 = vsyncpa [#allocation4], 1 }
 0x2cc   :  { %431 = vsyncpa [#allocation7], 1 }
 0x2cd   :  { %432 = vsyncpa [#allocation5], 1 }

</bundles_post_ra>
